<compile_context>
chip_gen: v7x
topology: tpu7x:2x2x1
jax: 0.10.0
libtpu: 0.0.40
codegen_flags: <defaults>
</compile_context>

<pallas_src>
import jax
import jax.numpy as jnp
from jax import lax
from jax.experimental import pallas as pl
from jax.experimental.pallas import tpu as pltpu


def _gate_kernel(tok_ref, emb_t_ref, inv_norm_ref, w_ref, idx_ref):
    # tok_ref: (TB, D); emb_t_ref: (D, E); inv_norm_ref: (1, E) f32.
    # Plain (TB,D)@(D,E): RHS already laid out with K on sublanes and experts
    # on lanes, so the vmatmul can issue right after the input DMA.
    sims_raw = lax.dot_general(
        tok_ref[...], emb_t_ref[...],
        dimension_numbers=(((1,), (0,)), ((), ())),
        preferred_element_type=jnp.float32)                      # (TB, E)

    # Per-expert (per-column) scale = 1/||emb_e||, applied to only TB*E
    # elements.  Per-row (token) scaling is argmax-invariant and omitted.
    sims = sims_raw * inv_norm_ref[...]                          # (TB, E)

    TB, E = sims.shape
    # argmax along experts, first index on ties (matches torch .max(dim=-1)).
    # NOTE: an all-NaN row would make the comparison all-false -> idx == E and
    # a zero weights row; inputs are assumed finite.
    max_sims = jnp.max(sims, axis=-1, keepdims=True)             # (TB, 1)
    expert_iota = lax.broadcasted_iota(jnp.int32, (TB, E), 1)    # (TB, E)
    idx = jnp.min(jnp.where(sims >= max_sims, expert_iota, jnp.int32(E)),
                  axis=-1, keepdims=True)                        # (TB, 1)

    # one-hot routing weights
    w_ref[...] = (expert_iota == idx).astype(jnp.float32)
    idx_ref[...] = idx.astype(jnp.int32)


def task_specific_gate(language_token, routing_embeddings, *, batch_block=512):
    """Pallas implementation of TaskSpecificGate.forward.

    Args:
      language_token: (B, D) float32 or bfloat16.
      routing_embeddings: (E, D) float32 or bfloat16 (fixed module buffer).
    Returns:
      weights: (B, E) float32 one-hot
      indices: (B, 1) int32
    """
    B, D = language_token.shape
    E, D2 = routing_embeddings.shape
    assert D == D2

    # Hoisted constant: inverse L2 norms of the routing prototypes.
    # F.normalize clamp x/max(||x||,1e-12) ~ x * rsqrt(max(||x||^2, 1e-24)).
    emb_f32 = routing_embeddings.astype(jnp.float32)
    inv_norm = lax.rsqrt(
        jnp.maximum(jnp.sum(emb_f32 * emb_f32, axis=-1), jnp.float32(1e-24))
    ).reshape(1, E)                                              # (1, E) f32

    # Feed bf16 straight to the MXU (f32 accumulation) only when both inputs
    # are already bf16; never downcast genuinely-f32 inputs (tie-break risk).
    if (language_token.dtype == jnp.bfloat16
            and routing_embeddings.dtype == jnp.bfloat16):
        compute_dtype = jnp.bfloat16
    else:
        compute_dtype = jnp.float32
    tok = language_token.astype(compute_dtype)
    # Pre-transpose once in the wrapper -> kernel RHS is (D, E).
    emb_t = routing_embeddings.astype(compute_dtype).T           # (D, E)

    out_shape = (jax.ShapeDtypeStruct((B, E), jnp.float32),
                 jax.ShapeDtypeStruct((B, 1), jnp.int32))

    itemsize = jnp.dtype(compute_dtype).itemsize
    cost = pl.CostEstimate(
        flops=2 * B * E * D,
        transcendentals=0,
        bytes_accessed=(B * D + D * E) * itemsize + 4 * (E + B * E + B))

    if B >= 2 * batch_block and B % batch_block == 0:
        # Large-batch path: parallel B grid (shards across v7x's 2 TCs) and
        # small per-step VMEM footprint.
        tb = batch_block
        weights, indices = pl.pallas_call(
            _gate_kernel,
            out_shape=out_shape,
            grid=(B // tb,),
            in_specs=[
                pl.BlockSpec((tb, D), lambda i: (i, 0)),
                pl.BlockSpec((D, E), lambda i: (0, 0)),
                pl.BlockSpec((1, E), lambda i: (0, 0)),
            ],
            out_specs=(
                pl.BlockSpec((tb, E), lambda i: (i, 0)),
                pl.BlockSpec((tb, 1), lambda i: (i, 0)),
            ),
            compiler_params=pltpu.CompilerParams(
                dimension_semantics=("parallel",)),
            cost_estimate=cost,
        )(tok, emb_t, inv_norm)
    else:
        # Small-batch path (common case): single invocation, everything
        # VMEM-resident, no grid / pipeline prologue.
        weights, indices = pl.pallas_call(
            _gate_kernel,
            out_shape=out_shape,
            in_specs=[
                pl.BlockSpec(memory_space=pltpu.MemorySpace.VMEM),
                pl.BlockSpec(memory_space=pltpu.MemorySpace.VMEM),
                pl.BlockSpec(memory_space=pltpu.MemorySpace.VMEM),
            ],
            out_specs=(
                pl.BlockSpec(memory_space=pltpu.MemorySpace.VMEM),
                pl.BlockSpec(memory_space=pltpu.MemorySpace.VMEM),
            ),
            cost_estimate=cost,
        )(tok, emb_t, inv_norm)
    return weights, indices


def _reference(language_token, routing_embeddings):
    eps = 1e-12
    tn = language_token / jnp.maximum(
        jnp.linalg.norm(language_token, axis=-1, keepdims=True), eps)
    en = routing_embeddings / jnp.maximum(
        jnp.linalg.norm(routing_embeddings, axis=-1, keepdims=True), eps)
    sims = tn @ en.T
    idx = jnp.argmax(sims, axis=-1)[:, None].astype(jnp.int32)
    w = jax.nn.one_hot(idx[:, 0], routing_embeddings.shape[0],
                       dtype=jnp.float32)
    return w, idx


if __name__ == "__main__":
    # Shapes consistent with the module: B=2 tokens of dim 768,
    # n_experts=10 routing prototypes.
    B, D, E = 2, 768, 10
    key = jax.random.PRNGKey(0)
    k_tok, k_emb = jax.random.split(key)
    language_token = jax.random.normal(k_tok, (B, D), dtype=jnp.float32)
    # Deterministic synthetic routing embeddings (module __init__ would hold
    # an (n_experts, language_token_dim) buffer).
    routing_embeddings = jax.random.normal(k_emb, (E, D), dtype=jnp.float32)

    weights, indices = task_specific_gate(language_token, routing_embeddings)
    jax.block_until_ready((weights, indices))

    ref_w, ref_idx = _reference(language_token, routing_embeddings)
    # NOTE: post-matmul column scaling changes rounding order vs
    # normalize-then-dot; exact cross-expert ties could in principle resolve
    # differently.  Random Gaussian inputs have no ties, so argmax matches.
    assert jnp.array_equal(indices, ref_idx), (indices, ref_idx)
    assert jnp.array_equal(weights, ref_w)
    assert jnp.all(jnp.sum(weights, axis=-1) == 1.0)

    print("KERNEL_OK")
</pallas_src>

<mosaic_0001>
module attributes {stable_mosaic.version = 11 : i64} {
  func.func @_gate_kernel(%arg0: memref<2x768xf32, #tpu.memory_space<vmem>>, %arg1: memref<768x10xf32, #tpu.memory_space<vmem>>, %arg2: memref<1x10xf32, #tpu.memory_space<vmem>>, %arg3: memref<2x10xf32, #tpu.memory_space<vmem>>, %arg4: memref<2x1xi32, #tpu.memory_space<vmem>>) attributes {dimension_semantics = [], scalar_prefetch = 0 : i64, scratch_operands = 0 : i64, tpu.core_type = #tpu.core_type<tc>} {
    %c0 = arith.constant 0 : index
    %c0_0 = arith.constant 0 : index
    %0 = vector.load %arg0[%c0, %c0_0] : memref<2x768xf32, #tpu.memory_space<vmem>>, vector<2x768xf32>
    %c0_1 = arith.constant 0 : index
    %c0_2 = arith.constant 0 : index
    %1 = vector.load %arg1[%c0_1, %c0_2] : memref<768x10xf32, #tpu.memory_space<vmem>>, vector<768x10xf32>
    %cst = arith.constant dense<0.000000e+00> : vector<2x10xf32>
    %2 = tpu.matmul %0, %1, %cst {dimension_numbers = #tpu.dot_dimension_numbers<[1], [0], [0], [1], [0, 0, 1, 1], [], []>} : vector<2x768xf32>, vector<768x10xf32>, vector<2x10xf32> -> vector<2x10xf32>
    %c0_3 = arith.constant 0 : index
    %c0_4 = arith.constant 0 : index
    %3 = vector.load %arg2[%c0_3, %c0_4] : memref<1x10xf32, #tpu.memory_space<vmem>>, vector<1x10xf32>
    %4 = vector.broadcast %3 : vector<1x10xf32> to vector<2x10xf32>
    %5 = arith.mulf %2, %4 : vector<2x10xf32>
    %cst_5 = arith.constant dense<0xFF800000> : vector<2xf32>
    %6 = vector.multi_reduction <maximumf>, %5, %cst_5 [1] : vector<2x10xf32> to vector<2xf32>
    %7 = vector.shape_cast %6 : vector<2xf32> to vector<2x1xf32>
    %8 = tpu.iota {dimensions = array<i32: 1>} : vector<2x10xi32>
    %9 = vector.broadcast %7 : vector<2x1xf32> to vector<2x10xf32>
    %10 = arith.cmpf oge, %5, %9 : vector<2x10xf32>
    %c10_i32 = arith.constant 10 : i32
    %11 = vector.broadcast %c10_i32 : i32 to vector<2x10xi32>
    %12 = arith.select %10, %8, %11 : vector<2x10xi1>, vector<2x10xi32>
    %cst_6 = arith.constant dense<2147483647> : vector<2xi32>
    %13 = vector.multi_reduction <minsi>, %12, %cst_6 [1] : vector<2x10xi32> to vector<2xi32>
    %14 = vector.shape_cast %13 : vector<2xi32> to vector<2x1xi32>
    %15 = vector.broadcast %14 : vector<2x1xi32> to vector<2x10xi32>
    %16 = arith.cmpi eq, %8, %15 : vector<2x10xi32>
    %17 = arith.extui %16 : vector<2x10xi1> to vector<2x10xi32>
    %18 = arith.sitofp %17 : vector<2x10xi32> to vector<2x10xf32>
    %c0_7 = arith.constant 0 : index
    %c0_8 = arith.constant 0 : index
    %19 = vector.load %arg3[%c0_7, %c0_8] : memref<2x10xf32, #tpu.memory_space<vmem>>, vector<2x10xf32>
    tpu.vector_store %arg3[%c0_7, %c0_8], %18 {strides = array<i32>} : memref<2x10xf32, #tpu.memory_space<vmem>>, vector<2x10xf32>,
    %c0_9 = arith.constant 0 : index
    %c0_10 = arith.constant 0 : index
    %20 = vector.load %arg4[%c0_9, %c0_10] : memref<2x1xi32, #tpu.memory_space<vmem>>, vector<2x1xi32>
    tpu.vector_store %arg4[%c0_9, %c0_10], %14 {strides = array<i32>} : memref<2x1xi32, #tpu.memory_space<vmem>>, vector<2x1xi32>,
    return
  }
}

</mosaic_0001>

<bundles_post_ra>
// kernel: tpu_custom_call.1
= control target key start
LH: loop header
LB: loop body
LE: loop exit
PB: predicated region body
PF: predicated region fallthrough
CT: control target
= control target key end

     0   :  { %v645_v47 = vmov 1983009808   ;;  %v121_v49 = vlaneseq  ;;  %s990_s0 = inlined_call_operand.vmem [shape: f32[2,768], index: 0, kind: input, shape index: {}]   ;;  %s991_s1 = inlined_call_operand.vmem [shape: f32[768,10], index: 1, kind: input, shape index: {}]   ;;  %s992_s2 = inlined_call_operand.vmem [shape: f32[1,10], index: 2, kind: input, shape index: {}]   ;;  %s993_s3 = inlined_call_operand.hbm [shape: f32[2,10], index: 3, kind: output, shape index: {0}]   ;;  %s994_s4 = inlined_call_operand.vmem [shape: s32[2,1], index: 4, kind: output, shape index: {1}]  }
   0x1   :  { %v35_v0 = vld [vmem:[%s991_s1 + $0x80] sm:$0xff]  ;;  %v36_v1 = vld [vmem:[%s991_s1 + $0x88] sm:$0xff]  ;;  %v37_v11 = vld [vmem:[%s991_s1 + $0x90] sm:$0xff]  ;;  %v119_v48 = vunpack.c.l.s4 %v645_v47 }
   0x2   :  { %v67_v2 = vld [vmem:[%s991_s1 + $0x180] sm:$0xff]  ;;  %v521_v3 = vpack.c.bf16 %v36_v1, %v35_v0  ;;  %v68_v4 = vld [vmem:[%s991_s1 + $0x188] sm:$0xff]  ;;  %v38_v13 = vld [vmem:[%s991_s1 + $0x98] sm:$0xff]  ;;  %v122_v0 = vshrl.u32 %v121_v49, 7 }
   0x3   :  { %v19_v5 = vld [vmem:[%s991_s1] sm:$0xff]  ;;  %v20_v6 = vld [vmem:[%s991_s1 + $0x8] sm:$0xff]  ;;  %v553_v7 = vpack.c.bf16 %v68_v4, %v67_v2  ;;  %v69_v14 = vld [vmem:[%s991_s1 + $0x190] sm:$0xff]  ;;  %v525_v16 = vpack.c.bf16 %v38_v13, %v37_v11  ;;  %v120_v63 = vunpack.c.0.s8 %v119_v48 }
   0x4   :  { %v523_v8 = vpack.c.bf16 %v20_v6, %v19_v5  ;;  %v51_v9 = vld [vmem:[%s991_s1 + $0x100] sm:$0xff]  ;;  %v52_v10 = vld [vmem:[%s991_s1 + $0x108] sm:$0xff]  ;;  %522 = vmatprep.subr.bf16.mxu0 %v521_v3  ;;  %v70_v15 = vld [vmem:[%s991_s1 + $0x198] sm:$0xff] }
   0x5   :  { %v555_v12 = vpack.c.bf16 %v52_v10, %v51_v9  ;;  %554 = vmatprep.subr.bf16.mxu1 %v553_v7  ;;  %v557_v17 = vpack.c.bf16 %v70_v15, %v69_v14  ;;  %v21_v18 = vld [vmem:[%s991_s1 + $0x10] sm:$0xff]  ;;  %v22_v19 = vld [vmem:[%s991_s1 + $0x18] sm:$0xff]  ;;  %v39_v23 = vld [vmem:[%s991_s1 + $0xa0] sm:$0xff]  ;;  %v123_v13 = vsub.s32 %v120_v63, %v122_v0 }
   0x6   :  { %524 = vmatpush3.bf16.msra.mxu0 %v523_v8  ;;  %v53_v20 = vld [vmem:[%s991_s1 + $0x110] sm:$0xff]  ;;  %v527_v21 = vpack.c.bf16 %v22_v19, %v21_v18  ;;  %v54_v22 = vld [vmem:[%s991_s1 + $0x118] sm:$0xff]  ;;  %v40_v24 = vld [vmem:[%s991_s1 + $0xa8] sm:$0xff] }
   0x7   :  { %556 = vmatpush3.bf16.msra.mxu1 %v555_v12  ;;  %526 = vmatprep.subr.bf16.mxu0 %v525_v16  ;;  %v559_v25 = vpack.c.bf16 %v54_v22, %v53_v20  ;;  %v529_v26 = vpack.c.bf16 %v40_v24, %v39_v23  ;;  %v71_v27 = vld [vmem:[%s991_s1 + $0x1a0] sm:$0xff]  ;;  %v72_v28 = vld [vmem:[%s991_s1 + $0x1a8] sm:$0xff]  ;;  %v41_v35 = vld [vmem:[%s991_s1 + $0xb0] sm:$0xff] }
   0x8   :  { %558 = vmatprep.subr.bf16.mxu1 %v557_v17  ;;  %v23_v29 = vld [vmem:[%s991_s1 + $0x20] sm:$0xff]  ;;  %v561_v30 = vpack.c.bf16 %v72_v28, %v71_v27  ;;  %v24_v31 = vld [vmem:[%s991_s1 + $0x28] sm:$0xff]  ;;  %v42_v36 = vld [vmem:[%s991_s1 + $0xb8] sm:$0xff] }
   0x9   :  { %v55_v32 = vld [vmem:[%s991_s1 + $0x120] sm:$0xff]  ;;  %v56_v33 = vld [vmem:[%s991_s1 + $0x128] sm:$0xff]  ;;  %v531_v34 = vpack.c.bf16 %v24_v31, %v23_v29  ;;  %v73_v37 = vld [vmem:[%s991_s1 + $0x1b0] sm:$0xff]  ;;  %v533_v39 = vpack.c.bf16 %v42_v36, %v41_v35 }
   0xa   :  { %528 = vmatpush3.bf16.msra.mxu0 %v527_v21  ;;  %v563_v38 = vpack.c.bf16 %v56_v33, %v55_v32  ;;  %v74_v40 = vld [vmem:[%s991_s1 + $0x1b8] sm:$0xff]  ;;  %v25_v41 = vld [vmem:[%s991_s1 + $0x30] sm:$0xff]  ;;  %v43_v46 = vld [vmem:[%s991_s1 + $0xc0] sm:$0xff] }
   0xb   :  { %560 = vmatpush3.bf16.msra.mxu1 %v559_v25  ;;  %530 = vmatprep.subr.bf16.mxu0 %v529_v26  ;;  %v26_v42 = vld [vmem:[%s991_s1 + $0x38] sm:$0xff]  ;;  %v565_v43 = vpack.c.bf16 %v74_v40, %v73_v37  ;;  %v57_v44 = vld [vmem:[%s991_s1 + $0x130] sm:$0xff]  ;;  %v44_v50 = vld [vmem:[%s991_s1 + $0xc8] sm:$0xff] }
   0xc   :  { %562 = vmatprep.subr.bf16.mxu1 %v561_v30  ;;  %v58_v45 = vld [vmem:[%s991_s1 + $0x138] sm:$0xff]  ;;  %v75_v51 = vld [vmem:[%s991_s1 + $0x1c0] sm:$0xff]  ;;  %v76_v52 = vld [vmem:[%s991_s1 + $0x1c8] sm:$0xff]  ;;  %v535_v53 = vpack.c.bf16 %v26_v42, %v25_v41  ;;  %v537_v55 = vpack.c.bf16 %v44_v50, %v43_v46 }
   0xd   :  { %v567_v54 = vpack.c.bf16 %v58_v45, %v57_v44  ;;  %v27_v56 = vld [vmem:[%s991_s1 + $0x40] sm:$0xff]  ;;  %v28_v57 = vld [vmem:[%s991_s1 + $0x48] sm:$0xff]  ;;  %v569_v59 = vpack.c.bf16 %v76_v52, %v75_v51  ;;  %v45_v61 = vld [vmem:[%s991_s1 + $0xd0] sm:$0xff] }
   0xe   :  { %532 = vmatpush3.bf16.msra.mxu0 %v531_v34  ;;  %v59_v58 = vld [vmem:[%s991_s1 + $0x140] sm:$0xff]  ;;  %v60_v60 = vld [vmem:[%s991_s1 + $0x148] sm:$0xff]  ;;  %v46_v62 = vld [vmem:[%s991_s1 + $0xd8] sm:$0xff]  ;;  %v539_v3 = vpack.c.bf16 %v28_v57, %v27_v56 }
   0xf   :  { %564 = vmatpush3.bf16.msra.mxu1 %v563_v38  ;;  %534 = vmatprep.subr.bf16.mxu0 %v533_v39  ;;  %v77_v1 = vld [vmem:[%s991_s1 + $0x1d0] sm:$0xff]  ;;  %v78_v2 = vld [vmem:[%s991_s1 + $0x1d8] sm:$0xff]  ;;  %v571_v4 = vpack.c.bf16 %v60_v60, %v59_v58  ;;  %v541_v5 = vpack.c.bf16 %v46_v62, %v45_v61  ;;  %v47_v11 = vld [vmem:[%s991_s1 + $0xe0] sm:$0xff] }
  0x10   :  { %566 = vmatprep.subr.bf16.mxu1 %v565_v43  ;;  %v29_v6 = vld [vmem:[%s991_s1 + $0x50] sm:$0xff]  ;;  %v30_v7 = vld [vmem:[%s991_s1 + $0x58] sm:$0xff]  ;;  %v573_v9 = vpack.c.bf16 %v78_v2, %v77_v1  ;;  %v48_v12 = vld [vmem:[%s991_s1 + $0xe8] sm:$0xff] }
  0x11   :  { %v61_v8 = vld [vmem:[%s991_s1 + $0x150] sm:$0xff]  ;;  %v62_v10 = vld [vmem:[%s991_s1 + $0x158] sm:$0xff]  ;;  %v79_v14 = vld [vmem:[%s991_s1 + $0x1e0] sm:$0xff]  ;;  %v543_v16 = vpack.c.bf16 %v30_v7, %v29_v6  ;;  %v545_v19 = vpack.c.bf16 %v48_v12, %v47_v11 }
  0x12   :  { %536 = vmatpush3.bf16.msra.mxu0 %v535_v53  ;;  %v80_v15 = vld [vmem:[%s991_s1 + $0x1e8] sm:$0xff]  ;;  %v31_v17 = vld [vmem:[%s991_s1 + $0x60] sm:$0xff]  ;;  %v575_v18 = vpack.c.bf16 %v62_v10, %v61_v8  ;;  %v49_v25 = vld [vmem:[%s991_s1 + $0xf0] sm:$0xff] }
  0x13   :  { %568 = vmatpush3.bf16.msra.mxu1 %v567_v54  ;;  %538 = vmatprep.subr.bf16.mxu0 %v537_v55  ;;  %v32_v20 = vld [vmem:[%s991_s1 + $0x68] sm:$0xff]  ;;  %v63_v21 = vld [vmem:[%s991_s1 + $0x160] sm:$0xff]  ;;  %v577_v23 = vpack.c.bf16 %v80_v15, %v79_v14  ;;  %v50_v26 = vld [vmem:[%s991_s1 + $0xf8] sm:$0xff] }
  0x14   :  { %570 = vmatprep.subr.bf16.mxu1 %v569_v59  ;;  %v17_v22 = vld [vmem:[%s990_s0] sm:$0xff]  ;;  %v64_v24 = vld [vmem:[%s991_s1 + $0x168] sm:$0xff]  ;;  %v81_v29 = vld [vmem:[%s991_s1 + $0x1f0] sm:$0xff]  ;;  %v547_v31 = vpack.c.bf16 %v32_v20, %v31_v17  ;;  %v549_v35 = vpack.c.bf16 %v50_v26, %v49_v25 }
  0x15   :  { %v124_v27 = vrot.slane %v17_v22, %v123_v13  ;;  %v117_v28 = vcombine.high %v17_v22, %v17_v22  ;;  %v82_v30 = vld [vmem:[%s991_s1 + $0x1f8] sm:$0xff]  ;;  %v579_v34 = vpack.c.bf16 %v64_v24, %v63_v21  ;;  %v33_v36 = vld [vmem:[%s991_s1 + $0x70] sm:$0xff]  ;;  %v99_v42 = vld [vmem:[%s991_s1 + $0x280] sm:$0xff] }
  0x16   :  { %540 = vmatpush3.bf16.msra.mxu0 %v539_v3  ;;  %v34_v37 = vld [vmem:[%s991_s1 + $0x78] sm:$0xff]  ;;  %v65_v38 = vld [vmem:[%s991_s1 + $0x170] sm:$0xff]  ;;  %v581_v39 = vpack.c.bf16 %v82_v30, %v81_v29  ;;  %v100_v43 = vld [vmem:[%s991_s1 + $0x288] sm:$0xff] }
  0x17   :  { %572 = vmatpush3.bf16.msra.mxu1 %v571_v4  ;;  %542 = vmatprep.subr.bf16.mxu0 %v541_v5  ;;  %v132_v32 = vcombine.high %v124_v27, %v124_v27  ;;  %v131_v33 = vrot.slane %v117_v28, %v123_v13  ;;  %v66_v40 = vld [vmem:[%s991_s1 + $0x178] sm:$0xff]  ;;  %v551_v44 = vpack.c.bf16 %v34_v37, %v33_v36  ;;  %v83_v47 = vld [vmem:[%s991_s1 + $0x200] sm:$0xff]  ;;  %v84_v48 = vld [vmem:[%s991_s1 + $0x208] sm:$0xff] }
  0x18   :  { %574 = vmatprep.subr.bf16.mxu1 %v573_v9  ;;  %v583_v45 = vpack.c.bf16 %v66_v40, %v65_v38  ;;  %v585_v46 = vpack.c.bf16 %v100_v43, %v99_v42  ;;  %v101_v50 = vld [vmem:[%s991_s1 + $0x290] sm:$0xff]  ;;  %v102_v51 = vld [vmem:[%s991_s1 + $0x298] sm:$0xff]  ;;  %v587_v52 = vpack.c.bf16 %v84_v48, %v83_v47  ;;  %v413_v53 = vld.sshfl [vmem:[%s990_s0 + $0x8] sm:$0x33 pattern:$0x76325410] }
  0x19   :  { %212 = vmatprep.mubr.f32.mxu0 %v132_v32  ;;  %v133_v41 = vcombine.high %v131_v33, %v131_v33  ;;  %v589_v54 = vpack.c.bf16 %v102_v51, %v101_v50  ;;  %v85_v55 = vld [vmem:[%s991_s1 + $0x210] sm:$0xff]  ;;  %v86_v56 = vld [vmem:[%s991_s1 + $0x218] sm:$0xff]  ;;  %v141_v57 = vcombine.high %v413_v53, %v413_v53 }
  0x1a   :  { %544 = vmatpush3.bf16.msra.mxu0 %v543_v16 }
  0x1b   :  { %576 = vmatpush3.bf16.msra.mxu1 %v575_v18  ;;  %546 = vmatprep.subr.bf16.mxu0 %v545_v19 }
  0x1c   :  { %578 = vmatprep.subr.bf16.mxu1 %v577_v23  ;;  %282 = vmatprep.mubr.f32.mxu1 %v133_v41 }
  0x1e   :  { %548 = vmatpush3.bf16.msra.mxu0 %v547_v31 }
  0x1f   :  { %580 = vmatpush3.bf16.msra.mxu1 %v579_v34  ;;  %550 = vmatprep.subr.bf16.mxu0 %v549_v35 }
  0x20   :  { %582 = vmatprep.subr.bf16.mxu1 %v581_v39 }
  0x22   :  { %552 = vmatpush3.bf16.msra.mxu0 %v551_v44 }
  0x23   :  { %584 = vmatpush3.bf16.msra.mxu1 %v583_v45  ;;  %586 = vmatprep.subr.bf16.mxu0 %v585_v46 }
  0x24   :  { %10 = vsyncpa [#allocation3], 0  ;;  %v103_v58 = vld [vmem:[%s991_s1 + $0x2a0] sm:$0xff]  ;;  %v104_v59 = vld [vmem:[%s991_s1 + $0x2a8] sm:$0xff]  ;;  %v591_v60 = vpack.c.bf16 %v86_v56, %v85_v55  ;;  %vm366_vm0 = vcmask 74752   ;;  %v371_v45 = vand.u32 127, %v121_v49 }
  0x25   :  { %213 = vmatmul.mubr.f32.vlgmr.msra.gmra.mrb[0].mxu0 %v124_v27  ;;  %v593_v61 = vpack.c.bf16 %v104_v59, %v103_v58  ;;  %v87_v62 = vld [vmem:[%s991_s1 + $0x220] sm:$0xff]  ;;  %v88_v63 = vld [vmem:[%s991_s1 + $0x228] sm:$0xff]  ;;  %v105_v0 = vld [vmem:[%s991_s1 + $0x2b0] sm:$0xff]  ;;  %vm393_vm3 = vcmask 1024  }
  0x26   :  { %283 = vmatmul.mubr.f32.vlgmr.msra.gmra.mrb[0].mxu1 %v131_v33  ;;  %588 = vmatpush3.bf16.msra.mxu0 %v587_v52  ;;  %v106_v1 = vld [vmem:[%s991_s1 + $0x2b8] sm:$0xff]  ;;  %v595_v2 = vpack.c.bf16 %v88_v63, %v87_v62  ;;  %v89_v4 = vld [vmem:[%s991_s1 + $0x230] sm:$0xff]  ;;  %v107_v6 = vld [vmem:[%s991_s1 + $0x2c0] sm:$0xff] }
  0x27   :  { %590 = vmatprep.subr.bf16.mxu0 %v589_v54  ;;  %352 = vmatprep.mubr.f32.mxu0 %v141_v57  ;;  %v597_v3 = vpack.c.bf16 %v106_v1, %v105_v0  ;;  %v90_v5 = vld [vmem:[%s991_s1 + $0x238] sm:$0xff]  ;;  %v108_v7 = vld [vmem:[%s991_s1 + $0x2c8] sm:$0xff]  ;;  %v91_v10 = vld [vmem:[%s991_s1 + $0x240] sm:$0xff] }
  0x28   :  { %v599_v8 = vpack.c.bf16 %v90_v5, %v89_v4  ;;  %v601_v9 = vpack.c.bf16 %v108_v7, %v107_v6  ;;  %v92_v11 = vld [vmem:[%s991_s1 + $0x248] sm:$0xff]  ;;  %v109_v12 = vld [vmem:[%s991_s1 + $0x2d0] sm:$0xff]  ;;  %v110_v13 = vld [vmem:[%s991_s1 + $0x2d8] sm:$0xff] }
  0x29   :  { %v603_v14 = vpack.c.bf16 %v92_v11, %v91_v10  ;;  %v605_v15 = vpack.c.bf16 %v110_v13, %v109_v12  ;;  %v93_v16 = vld [vmem:[%s991_s1 + $0x250] sm:$0xff]  ;;  %v94_v17 = vld [vmem:[%s991_s1 + $0x258] sm:$0xff]  ;;  %v111_v18 = vld [vmem:[%s991_s1 + $0x2e0] sm:$0xff] }
  0x2a   :  { %592 = vmatpush3.bf16.msra.mxu0 %v591_v60  ;;  %v112_v19 = vld [vmem:[%s991_s1 + $0x2e8] sm:$0xff]  ;;  %v607_v20 = vpack.c.bf16 %v94_v17, %v93_v16  ;;  %v95_v22 = vld [vmem:[%s991_s1 + $0x260] sm:$0xff]  ;;  %v113_v24 = vld [vmem:[%s991_s1 + $0x2f0] sm:$0xff]  ;;  %v647_v60 = vmov 0.0  }
  0x2b   :  { %594 = vmatprep.subr.bf16.mxu0 %v593_v61  ;;  %v609_v21 = vpack.c.bf16 %v112_v19, %v111_v18  ;;  %v96_v23 = vld [vmem:[%s991_s1 + $0x268] sm:$0xff]  ;;  %v114_v25 = vld [vmem:[%s991_s1 + $0x2f8] sm:$0xff]  ;;  %v97_v28 = vld [vmem:[%s991_s1 + $0x270] sm:$0xff] }
  0x2c   :  { %v611_v26 = vpack.c.bf16 %v96_v23, %v95_v22  ;;  %v613_v27 = vpack.c.bf16 %v114_v25, %v113_v24  ;;  %v98_v29 = vld [vmem:[%s991_s1 + $0x278] sm:$0xff]  ;;  %v414_v41 = vld [vmem:[%s992_s2] ss:$0 sm:$0xff]  ;;  %s646_s1 = smov [#allocation2]  }
  0x2d   :  { %v615_v30 = vpack.c.bf16 %v98_v29, %v97_v28  ;;  %s401_s2 = sshll.u32 %s646_s1, 4  ;;  %s402_s2 = int_to_ptr.vmem [resolvable:$true] %s401_s2 }
  0x2e   :  { %596 = vmatpush3.bf16.msra.mxu0 %v595_v2  ;;  %s621_s5 = scalar_lea.vmem %s402_s2, 32  ;;  %p626_p1 = scmp.lt.s32.totalorder %s402_s2, %s402_s2 }
  0x2f   :  { %598 = vmatprep.subr.bf16.mxu0 %v597_v3  ;;  %p622_p0 = scmp.ne.s32.totalorder %s402_s2, %s621_s5  ;;  %p627_p2 = scmp.lt.s32.totalorder %s621_s5, %s621_s5 }
  0x31   :  { %p628_p3 = por %p627_p2, %p626_p1 }
  0x32   :  { %600 = vmatpush3.bf16.msra.mxu0 %v599_v8 }
  0x33   :  { %602 = vmatprep.subr.bf16.mxu0 %v601_v9  ;;  %p629_p4 = pnand %p628_p3, %p622_p0 }
  0x36   :  { %604 = vmatpush3.bf16.msra.mxu0 %v603_v14 }
  0x37   :  { %606 = vmatprep.subr.bf16.mxu0 %v605_v15 }
  0x3a   :  { %608 = vmatpush3.bf16.msra.mxu0 %v607_v20 }
  0x3b   :  { %610 = vmatprep.subr.bf16.mxu0 %v609_v21 }
  0x3e   :  { %612 = vmatpush3.bf16.msra.mxu0 %v611_v26 }
  0x3f   :  { %614 = vmatprep.subr.bf16.mxu0 %v613_v27 }
  0x42   :  { %616 = vmatpush3.bf16.msra.mxu0 %v615_v30 }
  0x45   :  { %353 = vmatmul.mubr.f32.vlgmr.msra.gmra.mrb[2].mxu0 %v413_v53 }
  0xf8   :  { %v448_v31 = vpop.f32.mrb[0].mxu0 }
  0xf9   :  { %v483_v32 = vpop.f32.mrb[0].mxu1  ;;  %v449_v33 = vpop.f32.mrb[1].mxu0 }
  0xfa   :  { %v450_v34 = vadd.f32 %v449_v33, %v448_v31  ;;  %v484_v35 = vpop.f32.mrb[1].mxu1 }
  0xfb   :  { %v485_v36 = vadd.f32 %v484_v35, %v483_v32 }
  0xfd   :  { %v285_v37 = vadd.f32 %v485_v36, %v450_v34 }
 0x118   :  { %v518_v38 = vpop.f32.mrb[2].mxu0 }
 0x119   :  { %v519_v39 = vpop.f32.mrb[3].mxu0 }
 0x11a   :  { %v520_v40 = vadd.f32 %v519_v39, %v518_v38 }
 0x11c   :  { %v355_v42 = vadd.f32 %v520_v40, %v285_v37 }
 0x11e   :  { %v365_v43 = vmul.f32 %v414_v41, %v355_v42 }
 0x120   :  { %v367_v44 = vsel %vm366_vm0, %v365_v43, -inf }
 0x121   :  { %368 = vmax.xlane.f32.xlu0 %v367_v44 }
 0x1ae   :  { %v369_v46 = vpop.xlane.xlu0 %368 }
 0x1af   :  { %vm372_vm1 = vcmp.ge.f32.partialorder %v365_v43, %v369_v46 }
 0x1b0   :  { %v373_v47 = vsel %vm372_vm1, %v371_v45, 10 }
 0x1b1   :  { %v374_v48 = vsel %vm366_vm0, %v373_v47, 2147483647 }
 0x1b2   :  { %v376_v50 = vshra.s32 %v374_v48, 16  ;;  %v375_v52 = vand.u32 65535, %v374_v48 }
 0x1b4   :  { %v378_v51 = vcvt.s32.f32 %v376_v50  ;;  %v377_v54 = vcvt.s32.f32 %v375_v52 }
 0x1b6   :  { %379 = vmin.xlane.f32.xlu0 %v378_v51 }
 0x243   :  { %v380_v53 = vpop.xlane.xlu0 %379 }
 0x244   :  { %vm381_vm2 = vcmp.eq.f32.partialorder %v378_v51, %v380_v53  ;;  %v386_v56 = vcvt.f32.s32 %v380_v53 }
 0x245   :  { %v382_v55 = vsel %vm381_vm2, %v377_v54, inf }
 0x246   :  { %383 = vmin.xlane.f32.xlu1 %v382_v55  ;;  %v387_v58 = vshll.u32 %v386_v56, 16 }
 0x2d3   :  { %v384_v57 = vpop.xlane.xlu1 %383 }
 0x2d4   :  { %v385_v59 = vcvt.f32.s32 %v384_v57 }
 0x2d6   :  { %v388_v49 = vadd.s32 %v387_v58, %v385_v59 }
 0x2d8   :  { %394 = vst.msk [vmem:[%s994_s4] sm:$0x3] %vm393_vm3, %v388_v49  ;;  %vm389_vm4 = vcmp.eq.s32.totalorder %v371_v45, %v388_v49 }
 0x2d9   :  { %v415_v61 = vsel %vm389_vm4, 1.0, %v647_v60 }
 0x2da   :  { %392 = vst.msk [vmem:[#allocation2] sm:$0x3] %vm366_vm0, %v415_v61 }
 0x2db   :  { %632 = shalt.err (!%p629_p4)
}
 0x2dc   :  { %s633_s8 = scalar_lea.hbm %s993_s3, 32 }
 0x2dd   :  { %p634_p5 = scmp.ne.s32.totalorder %s993_s3, %s633_s8  ;;  %p637_p6 = scmp.lt.u32.totalorder %s633_s8, %s993_s3 }
 0x2df   :  { %p639_p7 = pnand %p637_p6, %p634_p5 }
 0x2e1   :  { %642 = shalt.err (!%p639_p7)
}
 0x2e2   :  { %404 = dma.vmem_to_hbm [thread:$0]  %s402_s2, 32, %s993_s3, [#allocation3]  }
 0x2e3   :  { %643 = dma.done.wait [#allocation3], 32  }
 0x2e4   :  { %644 = vsyncadd [#allocation3], 4294967264 }
 0x2e5   :  { %412 = vsyncpa [#allocation3], 1 }

</bundles_post_ra>
